<compile_context>
chip_gen: v7x
topology: tpu7x:2x2x1
jax: 0.10.0
libtpu: 0.0.40
codegen_flags: <defaults>
</compile_context>

<pallas_src>
import functools
import math

import jax
import jax.numpy as jnp
from jax.experimental import pallas as pl
from jax.experimental.pallas import tpu as pltpu


def _round_up(x, m):
    return ((x + m - 1) // m) * m


def _is_gen6_plus():
    """Best-effort chip-generation check (256-wide MXU on v6e/v7x)."""
    try:
        kind = jax.devices()[0].device_kind.lower()
        return not any(g in kind for g in ("v2", "v3", "v4", "v5"))
    except Exception:
        return True


# ----------------------------------------------------------------------------
# Pallas kernel: out = act( (patches @ w_scaled) + shift )
#   grid = (M_tiles, K_tiles); K is the reduction ("arbitrary") axis with an
#   f32 VMEM accumulator.  BN scale is pre-folded into the weight.
# ----------------------------------------------------------------------------
def _gemm_bn_silu_kernel(p_ref, w_ref, shift_ref, o_ref, acc_ref, *, apply_silu):
    kk = pl.program_id(1)

    @pl.when(kk == 0)
    def _():
        acc_ref[...] = jnp.zeros_like(acc_ref)

    acc_ref[...] += jnp.dot(p_ref[...], w_ref[...],
                            preferred_element_type=jnp.float32)

    @pl.when(kk == pl.num_programs(1) - 1)
    def _():
        y = acc_ref[...] + shift_ref[...]
        if apply_silu:
            # SiLU(y) = y * sigmoid(y) = y / (1 + exp(-y)).
            # exp + approx reciprocal both go to the EUP slot (free-ish when
            # the epilogue, not the MXU, is the binding slot for small K).
            y = y * pl.reciprocal(1.0 + jnp.exp(-y), approx=True)
        o_ref[...] = y.astype(o_ref.dtype)


def _fused_gemm_bn_silu(patches, w_mat, shift, *, tm, tk, apply_silu, out_dtype):
    M, K = patches.shape
    OC = w_mat.shape[1]
    assert M % tm == 0 and K % tk == 0, (M, tm, K, tk)
    kt = K // tk
    kernel = functools.partial(_gemm_bn_silu_kernel, apply_silu=apply_silu)
    return pl.pallas_call(
        kernel,
        out_shape=jax.ShapeDtypeStruct((M, OC), out_dtype),
        grid_spec=pltpu.PrefetchScalarGridSpec(
            num_scalar_prefetch=0,
            grid=(M // tm, kt),
            in_specs=[
                pl.BlockSpec((tm, tk), lambda i, k: (i, k)),    # patches stream
                pl.BlockSpec((tk, OC), lambda i, k: (k, 0)),    # weight K-tiles
                pl.BlockSpec((1, OC), lambda i, k: (0, 0)),     # resident shift
            ],
            out_specs=pl.BlockSpec((tm, OC), lambda i, k: (i, 0)),
            scratch_shapes=[pltpu.VMEM((tm, OC), jnp.float32)],
        ),
        compiler_params=pltpu.CompilerParams(
            # M tiles independent -> megacore-shardable on v7x; K is reduction.
            dimension_semantics=("parallel", "arbitrary"),
        ),
        cost_estimate=pl.CostEstimate(
            flops=2 * M * K * OC,
            transcendentals=(M * OC) if apply_silu else 0,
            bytes_accessed=(patches.size * patches.dtype.itemsize
                            + w_mat.size * w_mat.dtype.itemsize
                            + shift.size * shift.dtype.itemsize
                            + M * OC * jnp.dtype(out_dtype).itemsize),
        ),
    )(patches, w_mat, shift)


# ----------------------------------------------------------------------------
# Glue: im2col + parameter folding + padding (plain JAX, fused under jit)
# ----------------------------------------------------------------------------
def _im2col(x, kh, kw, stride, padding, dilation, dtype):
    # x: (N, C, H, W) -> patches: (N*OH*OW, C*KH*KW), plus (OH, OW)
    x = x.astype(dtype)                       # cast early: halves layout bytes
    x = jnp.pad(x, ((0, 0), (0, 0), (padding, padding), (padding, padding)))
    N, C, H, W = x.shape
    oh = (H - (kh - 1) * dilation - 1) // stride + 1
    ow = (W - (kw - 1) * dilation - 1) // stride + 1
    cols = []
    for i in range(kh):
        for j in range(kw):
            hi = i * dilation
            wj = j * dilation
            cols.append(
                x[:, :, hi:hi + stride * (oh - 1) + 1:stride,
                        wj:wj + stride * (ow - 1) + 1:stride]
            )
    # (N, C, KH*KW, OH, OW) -> (N, OH, OW, C, KH*KW) -> (N*OH*OW, C*KH*KW)
    patches = jnp.stack(cols, axis=2)
    patches = patches.transpose(0, 3, 4, 1, 2).reshape(N * oh * ow, C * kh * kw)
    return patches, oh, ow


def basic_conv_forward(x, params, *, stride=1, padding=0, dilation=1, groups=1,
                       silu=True, bn=True, bias=True, eps=1e-5,
                       tm_max=256, target_steps=8,
                       compute_dtype=jnp.bfloat16, out_dtype=jnp.float32,
                       channels_last=False):
    """Forward pass matching BasicConv.forward (eval-mode BN). x is NCHW."""
    if groups != 1:
        # TODO(synk): grouped conv not implemented.
        raise NotImplementedError("groups != 1 not supported")

    w = params["conv_w"]                      # (OC, IC, KH, KW)
    OC, IC, KH, KW = w.shape
    N = x.shape[0]

    patches, oh, ow = _im2col(x, KH, KW, stride, padding, dilation, compute_dtype)
    M, K = patches.shape

    conv_b = (params["conv_b"].astype(jnp.float32) if bias
              else jnp.zeros((OC,), jnp.float32))
    if bn:
        scale = params["bn_gamma"] / jnp.sqrt(params["bn_running_var"] + eps)
        shift = (conv_b - params["bn_running_mean"]) * scale + params["bn_beta"]
    else:
        scale = jnp.ones((OC,), jnp.float32)
        shift = conv_b

    # Fold BN scale into the f32 weight (exact per-OC), then cast to bf16.
    w_mat = w.reshape(OC, IC * KH * KW).T.astype(jnp.float32) * scale[None, :]

    # ---- tile geometry ------------------------------------------------------
    # K: untiled if small (pad to 16 = bf16 sublane packing); else stream
    #    512-wide K tiles so the weight never has to be fully VMEM-resident.
    if _round_up(K, 16) <= 1024:
        k_pad = _round_up(K, 16)
        tk = k_pad
    else:
        tk = 512
        k_pad = _round_up(K, tk)

    # OC: lane-dense output; 256 alignment on v6e/v7x (256-wide MXU) when it
    #     doesn't blow up small-OC layers, 128 otherwise / on v5e.
    oc_align = 256 if (OC > 128 and _is_gen6_plus()) else 128
    oc_pad = _round_up(OC, oc_align)

    # M: enough grid steps for double-buffering + v7x megacore split.
    tm = min(tm_max, max(16, _round_up(-(-M // target_steps), 16)))
    m_pad = _round_up(M, tm)

    patches_p = jnp.pad(patches, ((0, m_pad - M), (0, k_pad - K)))
    w_p = jnp.pad(w_mat.astype(compute_dtype), ((0, k_pad - K), (0, oc_pad - OC)))
    shift_p = jnp.pad(shift.astype(jnp.float32)[None, :],
                      ((0, 0), (0, oc_pad - OC)))

    out = _fused_gemm_bn_silu(patches_p, w_p, shift_p, tm=tm, tk=tk,
                              apply_silu=silu, out_dtype=out_dtype)

    # (M_pad, OC_pad) -> (M, OC) -> (N, OH, OW, OC)
    out = out[:M, :OC].reshape(N, oh, ow, OC)
    if channels_last:
        return out                            # skip NHWC->NCHW transpose
    return out.transpose(0, 3, 1, 2)          # NCHW to match the PyTorch module


# ----------------------------------------------------------------------------
# Reference (pure JAX/XLA) for sanity checking
# ----------------------------------------------------------------------------
def basic_conv_reference(x, params, *, stride=1, padding=0, dilation=1, eps=1e-5):
    w = params["conv_w"]
    y = jax.lax.conv_general_dilated(
        x, w,
        window_strides=(stride, stride),
        padding=[(padding, padding), (padding, padding)],
        rhs_dilation=(dilation, dilation),
        dimension_numbers=("NCHW", "OIHW", "NCHW"),
    )
    y = y + params["conv_b"][None, :, None, None]
    scale = params["bn_gamma"] / jnp.sqrt(params["bn_running_var"] + eps)
    y = (y - params["bn_running_mean"][None, :, None, None]) * \
        scale[None, :, None, None] + params["bn_beta"][None, :, None, None]
    return y * jax.nn.sigmoid(y)


# ----------------------------------------------------------------------------
# Main
# ----------------------------------------------------------------------------
if __name__ == "__main__":
    # BasicConv(in_planes=4, out_planes=8, kernel_size=3, stride=1, padding=1)
    IN_PLANES, OUT_PLANES, KSIZE, STRIDE, PAD = 4, 8, 3, 1, 1
    N, H, W = 2, 16, 16

    key = jax.random.PRNGKey(0)
    k_x, k_w, k_b = jax.random.split(key, 3)

    # Deterministic parameter init (shapes from nn.Conv2d / nn.BatchNorm2d).
    fan_in = IN_PLANES * KSIZE * KSIZE
    bound = 1.0 / math.sqrt(fan_in)
    params = {
        "conv_w": jax.random.uniform(
            k_w, (OUT_PLANES, IN_PLANES, KSIZE, KSIZE),
            minval=-bound, maxval=bound, dtype=jnp.float32),
        "conv_b": jax.random.uniform(
            k_b, (OUT_PLANES,), minval=-bound, maxval=bound, dtype=jnp.float32),
        "bn_gamma": jnp.ones((OUT_PLANES,), jnp.float32),
        "bn_beta": jnp.zeros((OUT_PLANES,), jnp.float32),
        "bn_running_mean": jnp.zeros((OUT_PLANES,), jnp.float32),
        "bn_running_var": jnp.ones((OUT_PLANES,), jnp.float32),
    }

    x = jax.random.normal(k_x, (N, IN_PLANES, H, W), dtype=jnp.float32)

    # Jit the whole forward so im2col / pad / cast / slice glue fuses.
    fwd = jax.jit(functools.partial(basic_conv_forward,
                                    stride=STRIDE, padding=PAD))
    out = jax.block_until_ready(fwd(x, params))

    ref_fn = jax.jit(functools.partial(basic_conv_reference,
                                       stride=STRIDE, padding=PAD))
    ref = jax.block_until_ready(ref_fn(x, params))

    assert out.shape == (N, OUT_PLANES, H, W), out.shape
    # bf16 MXU inputs (f32 accumulate) + approx reciprocal -> loose tolerance.
    err = float(jnp.max(jnp.abs(out - ref)))
    assert jnp.allclose(out, ref, atol=2e-2, rtol=2e-2), err

    print("KERNEL_OK")
</pallas_src>

<mosaic_0001>
module attributes {stable_mosaic.version = 11 : i64} {
  func.func @_gemm_bn_silu_kernel(%arg0: i32, %arg1: i32, %arg2: memref<64x48xbf16, #tpu.memory_space<vmem>>, %arg3: memref<48x128xbf16, #tpu.memory_space<vmem>>, %arg4: memref<1x128xf32, #tpu.memory_space<vmem>>, %arg5: memref<64x128xf32, #tpu.memory_space<vmem>>, %arg6: memref<64x128xf32, #tpu.memory_space<vmem>>) attributes {dimension_semantics = [#tpu.dimension_semantics<parallel>, #tpu.dimension_semantics<arbitrary>], iteration_bounds = array<i64: 8, 1>, scalar_prefetch = 0 : i64, scratch_operands = 1 : i64, tpu.core_type = #tpu.core_type<tc>, window_params = [{transform_indices = @transform_0, window_bounds = array<i64: 64, 48>}, {transform_indices = @transform_1, window_bounds = array<i64: 48, 128>}, {pipeline_mode = #tpu.pipeline_mode<synchronous>, transform_indices = @transform_2, window_bounds = array<i64: 1, 128>}, {transform_indices = @transform_3, window_bounds = array<i64: 64, 128>}]} {
    %c0_i32 = arith.constant 0 : i32
    %0 = arith.cmpi eq, %arg1, %c0_i32 : i32
    %1 = arith.extui %0 : i1 to i32
    %c0_i32_0 = arith.constant 0 : i32
    %2 = arith.cmpi ne, %1, %c0_i32_0 : i32
    scf.if %2 {
      %cst_10 = arith.constant 0.000000e+00 : f32
      %12 = vector.broadcast %cst_10 : f32 to vector<64x128xf32>
      %c0_11 = arith.constant 0 : index
      %c0_12 = arith.constant 0 : index
      %13 = vector.load %arg6[%c0_11, %c0_12] : memref<64x128xf32, #tpu.memory_space<vmem>>, vector<64x128xf32>
      tpu.vector_store %arg6[%c0_11, %c0_12], %12 {strides = array<i32>} : memref<64x128xf32, #tpu.memory_space<vmem>>, vector<64x128xf32>,
    } else {
    }
    %c0 = arith.constant 0 : index
    %c0_1 = arith.constant 0 : index
    %3 = vector.load %arg6[%c0, %c0_1] : memref<64x128xf32, #tpu.memory_space<vmem>>, vector<64x128xf32>
    %c0_2 = arith.constant 0 : index
    %c0_3 = arith.constant 0 : index
    %4 = vector.load %arg2[%c0_2, %c0_3] : memref<64x48xbf16, #tpu.memory_space<vmem>>, vector<64x48xbf16>
    %c0_4 = arith.constant 0 : index
    %c0_5 = arith.constant 0 : index
    %5 = vector.load %arg3[%c0_4, %c0_5] : memref<48x128xbf16, #tpu.memory_space<vmem>>, vector<48x128xbf16>
    %cst = arith.constant dense<0.000000e+00> : vector<64x128xf32>
    %6 = tpu.matmul %4, %5, %cst {dimension_numbers = #tpu.dot_dimension_numbers<[1], [0], [0], [1], [0, 0, 1, 1], [], []>} : vector<64x48xbf16>, vector<48x128xbf16>, vector<64x128xf32> -> vector<64x128xf32>
    %7 = arith.addf %3, %6 : vector<64x128xf32>
    %c0_6 = arith.constant 0 : index
    %c0_7 = arith.constant 0 : index
    %8 = vector.load %arg6[%c0_6, %c0_7] : memref<64x128xf32, #tpu.memory_space<vmem>>, vector<64x128xf32>
    tpu.vector_store %arg6[%c0_6, %c0_7], %7 {strides = array<i32>} : memref<64x128xf32, #tpu.memory_space<vmem>>, vector<64x128xf32>,
    %c0_i32_8 = arith.constant 0 : i32
    %9 = arith.cmpi eq, %arg1, %c0_i32_8 : i32
    %10 = arith.extui %9 : i1 to i32
    %c0_i32_9 = arith.constant 0 : i32
    %11 = arith.cmpi ne, %10, %c0_i32_9 : i32
    scf.if %11 {
      %c0_10 = arith.constant 0 : index
      %c0_11 = arith.constant 0 : index
      %12 = vector.load %arg6[%c0_10, %c0_11] : memref<64x128xf32, #tpu.memory_space<vmem>>, vector<64x128xf32>
      %c0_12 = arith.constant 0 : index
      %c0_13 = arith.constant 0 : index
      %13 = vector.load %arg4[%c0_12, %c0_13] : memref<1x128xf32, #tpu.memory_space<vmem>>, vector<1x128xf32>
      %14 = vector.broadcast %13 : vector<1x128xf32> to vector<64x128xf32>
      %15 = arith.addf %12, %14 : vector<64x128xf32>
      %cst_14 = arith.constant 0.000000e+00 : f32
      %16 = vector.broadcast %cst_14 : f32 to vector<64x128xf32>
      %17 = arith.subf %16, %15 : vector<64x128xf32>
      %18 = math.exp %17 : vector<64x128xf32>
      %cst_15 = arith.constant 1.000000e+00 : f32
      %19 = vector.broadcast %cst_15 : f32 to vector<64x128xf32>
      %20 = arith.addf %19, %18 : vector<64x128xf32>
      %21 = tpu.reciprocal %20 {approx = true} : vector<64x128xf32> -> vector<64x128xf32>
      %22 = arith.mulf %15, %21 : vector<64x128xf32>
      %c0_16 = arith.constant 0 : index
      %c0_17 = arith.constant 0 : index
      %23 = vector.load %arg5[%c0_16, %c0_17] : memref<64x128xf32, #tpu.memory_space<vmem>>, vector<64x128xf32>
      tpu.vector_store %arg5[%c0_16, %c0_17], %22 {strides = array<i32>} : memref<64x128xf32, #tpu.memory_space<vmem>>, vector<64x128xf32>,
    } else {
    }
    return
  }
  func.func @transform_0(%arg0: i32, %arg1: i32) -> (i32, i32) {
    %c0_i32 = arith.constant 0 : i32
    return %arg0, %arg1 : i32, i32
  }
  func.func @transform_1(%arg0: i32, %arg1: i32) -> (i32, i32) {
    %c0_i32 = arith.constant 0 : i32
    %c0_i32_0 = arith.constant 0 : i32
    return %arg1, %c0_i32 : i32, i32
  }
  func.func @transform_2(%arg0: i32, %arg1: i32) -> (i32, i32) {
    %c0_i32 = arith.constant 0 : i32
    %c0_i32_0 = arith.constant 0 : i32
    %c0_i32_1 = arith.constant 0 : i32
    return %c0_i32, %c0_i32_0 : i32, i32
  }
  func.func @transform_3(%arg0: i32, %arg1: i32) -> (i32, i32) {
    %c0_i32 = arith.constant 0 : i32
    %c0_i32_0 = arith.constant 0 : i32
    return %arg0, %c0_i32 : i32, i32
  }
}

</mosaic_0001>

<bundles_post_ra>
// kernel: basic_conv_forward.1
= control target key start
LH: loop header
LB: loop body
LE: loop exit
PB: predicated region body
PF: predicated region fallthrough
CT: control target
= control target key end

     0   :  { %s709_s12 = smov 0   ;;  %s711_s13 = smov 0   ;;  %s790_s0 = inlined_call_operand.vmem [shape: bf16[512,48], index: 0, kind: input, shape index: {}]   ;;  %s791_s1 = inlined_call_operand.vmem [shape: bf16[48,128], index: 1, kind: input, shape index: {}]   ;;  %s792_s2 = inlined_call_operand.vmem [shape: f32[1,128], index: 2, kind: input, shape index: {}]   ;;  %s793_s3 = inlined_call_operand.vmem [shape: f32[512,128], index: 3, kind: output, shape index: {}]  }
   0x1   :  { %s713_s14 = smov 0  }
   0x2 LB: > { %s25_s15 = sadd.s32 1, %s683_s13  ;;  %p556_p0 = scmp.ge.s32.totalorder %s687_s14, 1  ;;  %s687_s14 = sphi %s713_s14, %s13_s14   ;;  %s683_s13 = sphi %s711_s13, %s795_s13   ;;  %s679_s12 = sphi %s709_s12, %s794_s12  }
   0x3   : > { %p27_p1 = scmp.ge.s32.totalorder %s25_s15, 8  ;;  %p166_p2 = scmp.lt.s32.totalorder %s687_s14, 9 }
   0x5   : > { %s797_s15 = smov (%p27_p1, %s25_s15), 0  ;;  %p167_p3 = pnand %p556_p0, %p166_p2 }
   0x6   : > { %v626_v0 = vld [vmem:[%s791_s1] sm:$0xff] (!%p167_p3)   ;;  %s557_s18 = sshll.u32 (!%p167_p3), %s679_s12, 3  ;;  %v627_v1 = vld [vmem:[%s791_s1 + $0x8] sm:$0xff] (!%p167_p3)   ;;  %v628_v2 = vld [vmem:[%s791_s1 + $0x10] sm:$0xff] (!%p167_p3)   ;;  %vm292_vm0 = vcmask (!%p167_p3), 392192  }
   0x7   : > { %170 = sbr.rel (%p167_p3) target bundleno = 271 (0x10f), region = 32  ;;  %p199_p4 = scmp.lt.s32.totalorder (!%p167_p3), %s557_s18, 63  ;;  %582 = vmatprep.subr.bf16.mxu0 (!%p167_p3), %v626_v0  ;;  %596 = vmatprep.subr.bf16.mxu1 (!%p167_p3), %v626_v0  ;;  %v572_v7 = vld [vmem:[%s792_s2] ss:$0 sm:$0xff] (!%p167_p3) }
   0x8   : > { %583 = vmatpush3.bf16.msra.mxu0 (!%p167_p3), %v626_v0  ;;  %599 = vmatpush3.bf16.msra.mxu1 (!%p167_p3), %v626_v0 }
   0x9   : > { %584 = vmatprep.subr.bf16.mxu0 (!%p167_p3), %v627_v1  ;;  %597 = vmatprep.subr.bf16.mxu1 (!%p167_p3), %v627_v1 }
   0xc   : > { %585 = vmatpush3.bf16.msra.mxu0 (!%p167_p3), %v627_v1  ;;  %600 = vmatpush3.bf16.msra.mxu1 (!%p167_p3), %v627_v1 }
   0xd   : > { %586 = vmatprep.subr.bf16.mxu0 (!%p167_p3), %v628_v2  ;;  %598 = vmatprep.subr.bf16.mxu1 (!%p167_p3), %v628_v2 }
   0xe   : > { %s799_s18 = smov (!%p199_p4, %s557_s18), 63 }
   0xf   : > { %s558_s23 = sshll.u32 %s799_s18, 2  ;;  %s560_s29 = sshll.u32 %s799_s18, 3 }
  0x10   : > { %s205_s26 = scalar_lea.vmem %s790_s0, %s558_s23  ;;  %587 = vmatpush3.bf16.msra.mxu0 %v628_v2  ;;  %601 = vmatpush3.bf16.msra.mxu1 %v628_v2  ;;  %s217_s5 = scalar_lea.vmem %s793_s3, %s560_s29 }
  0x11   : > { %v629_v3 = vld [vmem:[%s205_s26] sm:$0xff]   ;;  %v630_v4 = vld [vmem:[%s205_s26 + $0x10] sm:$0xff]   ;;  %v631_v5 = vld [vmem:[%s205_s26 + $0x8] sm:$0xff]  }
  0x12   : > { %588 = vmatprep.mubr.msk.bf16.mxu0 %vm292_vm0, %v629_v3  ;;  %592 = vmatprep.mubr.msk.bf16.mxu1 %vm292_vm0, %v630_v4  ;;  %v632_v6 = vld [vmem:[%s205_s26 + $0x18] sm:$0xff]  }
  0x13   : > { %589 = vmatmul.mubr.msk.bf16.vlgmr.msra.gmra.mrb[0].mxu0 %vm292_vm0, %v631_v5  ;;  %593 = vmatmul.mubr.msk.bf16.vlgmr.msra.gmra.mrb[0].mxu1 %vm292_vm0, %v632_v6 }
  0xe6   : > { %v590_v8 = vpop.f32.mrb[0].mxu0  ;;  %v594_v9 = vpop.f32.mrb[0].mxu1 }
  0xe7   : > { %v745_v10 = vadd.f32 %v590_v8, %v572_v7  ;;  %v747_v11 = vadd.f32 %v594_v9, %v572_v7  ;;  %v339_v12 = vpop.f32.mrb[1].mxu0  ;;  %v355_v13 = vpop.f32.mrb[1].mxu1 }
  0xe8   : > { %v749_v14 = vadd.f32 %v572_v7, %v339_v12  ;;  %v751_v15 = vadd.f32 %v572_v7, %v355_v13  ;;  %v591_v16 = vpop.f32.mrb[2].mxu0  ;;  %v595_v17 = vpop.f32.mrb[2].mxu1 }
  0xe9   : > { %v414_v18 = vsub.f32 0.0, %v745_v10  ;;  %v418_v19 = vsub.f32 0.0, %v747_v11  ;;  %v755_v20 = vadd.f32 %v591_v16, %v572_v7  ;;  %v757_v21 = vadd.f32 %v595_v17, %v572_v7  ;;  %v342_v22 = vpop.f32.mrb[3].mxu0  ;;  %v358_v23 = vpop.f32.mrb[3].mxu1 }
  0xea   : > { %v412_v24 = vsub.f32 0.0, %v749_v14  ;;  %v416_v25 = vsub.f32 0.0, %v751_v15  ;;  %v761_v26 = vadd.f32 %v572_v7, %v342_v22  ;;  %v763_v27 = vadd.f32 %v572_v7, %v358_v23 }
  0xeb   : > { %v424_v28 = vmul.f32 1.442695, %v414_v18  ;;  %v432_v29 = vmul.f32 1.442695, %v418_v19  ;;  %v415_v30 = vsub.f32 0.0, %v755_v20  ;;  %v419_v31 = vsub.f32 0.0, %v757_v21 }
  0xec   : > { %v420_v32 = vmul.f32 1.442695, %v412_v24  ;;  %v428_v33 = vmul.f32 1.442695, %v416_v25  ;;  %v413_v34 = vsub.f32 0.0, %v761_v26  ;;  %v417_v35 = vsub.f32 0.0, %v763_v27 }
  0xed   : > { %633 = vpow2.f32 %v424_v28  ;;  %v426_v36 = vmul.f32 1.442695, %v415_v30  ;;  %v434_v37 = vmul.f32 1.442695, %v419_v31 }
  0xee   : > { %635 = vpow2.f32 %v432_v29  ;;  %v422_v38 = vmul.f32 1.442695, %v413_v34  ;;  %v430_v39 = vmul.f32 1.442695, %v417_v35 }
  0xef   : > { %637 = vpow2.f32 %v420_v32 }
  0xf0   : > { %639 = vpow2.f32 %v428_v33 }
  0xf1   : > { %641 = vpow2.f32 %v426_v36 }
  0xf2   : > { %643 = vpow2.f32 %v434_v37 }
  0xf3   : > { %645 = vpow2.f32 %v422_v38 }
  0xf4   : > { %647 = vpow2.f32 %v430_v39 }
  0xf7   : > { %v634_v40 = vpop.eup %633 }
  0xf8   : > { %v636_v41 = vpop.eup %635  ;;  %v438_v42 = vadd.f32 1.0, %v634_v40 }
  0xf9   : > { %v638_v43 = vpop.eup %637  ;;  %v442_v44 = vadd.f32 1.0, %v636_v41 }
  0xfa   : > { %v640_v45 = vpop.eup %639  ;;  %649 = vrcp.f32 %v438_v42  ;;  %v436_v46 = vadd.f32 1.0, %v638_v43 }
  0xfb   : > { %v642_v47 = vpop.eup %641  ;;  %651 = vrcp.f32 %v442_v44  ;;  %v440_v48 = vadd.f32 1.0, %v640_v45 }
  0xfc   : > { %v644_v49 = vpop.eup %643  ;;  %653 = vrcp.f32 %v436_v46  ;;  %v439_v50 = vadd.f32 1.0, %v642_v47 }
  0xfd   : > { %v646_v51 = vpop.eup %645  ;;  %655 = vrcp.f32 %v440_v48  ;;  %v443_v52 = vadd.f32 1.0, %v644_v49 }
  0xfe   : > { %v648_v53 = vpop.eup %647  ;;  %657 = vrcp.f32 %v439_v50  ;;  %v437_v54 = vadd.f32 1.0, %v646_v51 }
  0xff   : > { %659 = vrcp.f32 %v443_v52  ;;  %v441_v55 = vadd.f32 1.0, %v648_v53 }
 0x100   : > { %661 = vrcp.f32 %v437_v54 }
 0x101   : > { %663 = vrcp.f32 %v441_v55 }
 0x104   : > { %v650_v56 = vpop.eup %649 }
 0x105   : > { %v652_v57 = vpop.eup %651  ;;  %v454_v58 = vmul.f32 %v650_v56, %v745_v10 }
 0x106   : > { %v654_v59 = vpop.eup %653  ;;  %v458_v60 = vmul.f32 %v652_v57, %v747_v11 }
 0x107   : > { %v656_v61 = vpop.eup %655  ;;  %462 = vst [vmem:[%s217_s5 + $0x10] sm:$0xff] %v454_v58  ;;  %v452_v62 = vmul.f32 %v654_v59, %v749_v14 }
 0x108   : > { %v658_v63 = vpop.eup %657  ;;  %466 = vst [vmem:[%s217_s5 + $0x30] sm:$0xff] %v458_v60  ;;  %v456_v0 = vmul.f32 %v656_v61, %v751_v15 }
 0x109   : > { %v660_v1 = vpop.eup %659  ;;  %460 = vst [vmem:[%s217_s5] sm:$0xff] %v452_v62  ;;  %v455_v2 = vmul.f32 %v658_v63, %v755_v20 }
 0x10a   : > { %v662_v3 = vpop.eup %661  ;;  %464 = vst [vmem:[%s217_s5 + $0x20] sm:$0xff] %v456_v0  ;;  %v459_v4 = vmul.f32 %v660_v1, %v757_v21 }
 0x10b   : > { %v664_v5 = vpop.eup %663  ;;  %463 = vst [vmem:[%s217_s5 + $0x18] sm:$0xff] %v455_v2  ;;  %v453_v6 = vmul.f32 %v662_v3, %v761_v26 }
 0x10c   : > { %467 = vst [vmem:[%s217_s5 + $0x38] sm:$0xff] %v459_v4  ;;  %v457_v7 = vmul.f32 %v664_v5, %v763_v27 }
 0x10d   : > { %461 = vst [vmem:[%s217_s5 + $0x8] sm:$0xff] %v453_v6 }
 0x10e   : > { %465 = vst [vmem:[%s217_s5 + $0x28] sm:$0xff] %v457_v7 }
 0x10f PF: > { %s13_s14 = sadd.s32 1, %s687_s14   ;;  %s794_s12 = smov %s683_s13 }
 0x110   : > { %p10_p5 = scmp.ge.s32.totalorder %s13_s14, 10   ;;  %s795_s13 = smov %s797_s15 }
 0x112   :  { %12 = sbr.rel (!%p10_p5) target bundleno = 2 (0x2), region = 73 }

</bundles_post_ra>
